<compile_context>
chip_gen: v7x
topology: tpu7x:2x2x1
jax: 0.10.0
libtpu: 0.0.40
codegen_flags: <defaults>
</compile_context>

<pallas_src>
import functools

import jax
import jax.numpy as jnp
from jax.experimental import pallas as pl
from jax.experimental.pallas import tpu as pltpu

INF = 1e7      # matches module default inf=10000000.0
EPS = 1e-7     # matches module default eposilon=1e-07


def _round_up(x, m):
    return ((x + m - 1) // m) * m


def _cdiv(a, b):
    return (a + b - 1) // b


def _smlce_kernel(y_pred_ref, y_true_ref, out_ref, g_acc, m_run, s_run, *,
                  n_cols, col_block, mask_zero):
    j = pl.program_id(1)
    n_col_tiles = pl.num_programs(1)

    yp = y_pred_ref[...].astype(jnp.float32)        # [TB, TN]
    yt = y_true_ref[...]                            # [TB, M] int32
    tb, tn = yp.shape
    m_slots = yt.shape[-1]

    # (re)initialize the per-row accumulators at the first column tile of each row block
    @pl.when(j == 0)
    def _init():
        g_acc[...] = jnp.full(g_acc.shape, -INF, jnp.float32)
        m_run[...] = jnp.full(m_run.shape, -INF, jnp.float32)
        s_run[...] = jnp.zeros(s_run.shape, jnp.float32)

    # global column index of every lane in this tile (built ONCE, reused below)
    col = j * col_block + jax.lax.broadcasted_iota(jnp.int32, (tb, tn), 1)

    # scores used for the "all classes" logsumexp: column 0 masked to -inf when mask_zero
    yp_all = jnp.where(col == 0, -INF, yp) if mask_zero else yp

    # ---- online logsumexp over the tiled score axis ----
    tile_max = jnp.max(yp_all, axis=-1, keepdims=True)                       # [TB, 1]
    new_m = jnp.maximum(m_run[...], tile_max)
    tile_sum = jnp.sum(jnp.exp(yp_all - new_m), axis=-1, keepdims=True)
    s_run[...] = s_run[...] * jnp.exp(m_run[...] - new_m) + tile_sum
    m_run[...] = new_m

    # ---- sparse gather of the M positive slots: static loop over slots (M is small) ----
    # A label's column lives in exactly one tile; elsewhere the masked max yields -INF,
    # so a running max across tiles reconstructs the gathered value.
    g_old = g_acc[...]                                                        # [TB, M]
    for s in range(m_slots):
        idx_s = yt[:, s:s + 1]                                                # [TB, 1]
        val_s = jnp.max(jnp.where(col == idx_s, yp, -INF), axis=-1, keepdims=True)
        g_acc[:, s:s + 1] = jnp.maximum(g_old[:, s:s + 1], val_s)

    # ---- finalize the per-row loss on the last column tile ----
    @pl.when(j == n_col_tiles - 1)
    def _finalize():
        g = g_acc[...]                                                        # [TB, M]
        base = jnp.where(yt == n_cols, 0.0, g)       # index N -> appended zero column
        if mask_zero:
            is_pad = yt == 0
            g1 = jnp.where(is_pad, INF, base)        # first gather  (col 0 := +inf)
            g2 = jnp.where(is_pad, -INF, base)       # second gather (col 0 := -inf)
        else:
            g1 = base
            g2 = base

        m_r = m_run[...]
        s_r = s_run[...]

        # all_loss = logsumexp(masked scores ++ [0])
        m_all = jnp.maximum(m_r, 0.0)
        all_loss = m_all + jnp.log(s_r * jnp.exp(m_r - m_all) + jnp.exp(-m_all))

        # pos_loss = logsumexp([-g1, 0])
        m_pos = jnp.maximum(jnp.max(-g1, axis=-1, keepdims=True), 0.0)
        pos_loss = m_pos + jnp.log(
            jnp.sum(jnp.exp(-g1 - m_pos), axis=-1, keepdims=True) + jnp.exp(-m_pos))

        # neg_loss = all_loss + log(clip(1 - exp(logsumexp(g2) - all_loss), eps, 1))
        m_p2 = jnp.max(g2, axis=-1, keepdims=True)
        lse_p2 = m_p2 + jnp.log(jnp.sum(jnp.exp(g2 - m_p2), axis=-1, keepdims=True))
        aux = jnp.clip(1.0 - jnp.exp(lse_p2 - all_loss), EPS, 1.0)
        neg_loss = all_loss + jnp.log(aux)

        out_ref[...] = pos_loss + neg_loss                                    # [TB, 1]


def sparse_multilabel_cross_entropy(y_pred, y_true, *, mask_zero=True,
                                    row_block=256, max_col_block=2048):
    """y_pred: [B, C, N] float (f32 or bf16); y_true: [B, C, M] int indices of positives
    (0 = padding when mask_zero). Returns the scalar loss = loss.sum(dim=1).mean()."""
    B, C, N = y_pred.shape
    M = y_true.shape[-1]
    BC = B * C

    yp = y_pred.reshape(BC, N)                       # keep the input dtype (bf16 stays bf16)
    yt = y_true.reshape(BC, M).astype(jnp.int32)

    # --- score axis: pad to a lane-dense multiple of 128 (with -INF columns) and tile ---
    n128 = _round_up(N, 128)
    n_col_tiles = _cdiv(n128, max_col_block)
    col_block = _round_up(_cdiv(n128, n_col_tiles), 128)
    Np = col_block * n_col_tiles
    if Np != N:
        yp = jnp.pad(yp, ((0, 0), (0, Np - N)), constant_values=-INF)

    # --- row axis: pad to a multiple of the row block (padded rows sliced away below) ---
    rb = min(_round_up(row_block, 8), _round_up(BC, 8))
    BCp = _round_up(BC, rb)
    if BCp != BC:
        yp = jnp.pad(yp, ((0, BCp - BC), (0, 0)))
        yt = jnp.pad(yt, ((0, BCp - BC), (0, 0)))

    grid = (BCp // rb, Np // col_block)

    per_row = pl.pallas_call(
        functools.partial(_smlce_kernel, n_cols=N, col_block=col_block, mask_zero=mask_zero),
        out_shape=jax.ShapeDtypeStruct((BCp, 1), jnp.float32),
        grid_spec=pltpu.PrefetchScalarGridSpec(
            num_scalar_prefetch=0,
            grid=grid,
            in_specs=[
                pl.BlockSpec((rb, col_block), lambda i, j: (i, j)),
                pl.BlockSpec((rb, M), lambda i, j: (i, 0)),
            ],
            out_specs=pl.BlockSpec((rb, 1), lambda i, j: (i, 0)),
            scratch_shapes=[
                pltpu.VMEM((rb, M), jnp.float32),   # running max of gathered positives
                pltpu.VMEM((rb, 1), jnp.float32),   # running max for the logsumexp
                pltpu.VMEM((rb, 1), jnp.float32),   # running sum for the logsumexp
            ],
        ),
        compiler_params=pltpu.CompilerParams(
            dimension_semantics=("parallel", "arbitrary"),
            vmem_limit_bytes=48 * 1024 * 1024,      # headroom for big tiles; <64 MiB for v7x
        ),
    )(yp, yt)

    loss_bc = per_row[:BC, 0].reshape(B, C)          # drop padded rows
    return loss_bc.sum(axis=1).mean()                # .sum(dim=1).mean() in the torch module


# ---- pure-JAX reference (mirrors the torch code 1:1), used only for validation ----
def _reference(y_pred, y_true, mask_zero=True):
    zeros = jnp.zeros_like(y_pred[..., :1])
    y_pred = jnp.concatenate([y_pred, zeros], axis=-1)
    if mask_zero:
        infs = zeros + INF
        y_pred = jnp.concatenate([infs, y_pred[..., 1:]], axis=-1)
    y_pos_2 = jnp.take_along_axis(y_pred, y_true, axis=-1)
    y_pos_1 = jnp.concatenate([y_pos_2, zeros], axis=-1)
    if mask_zero:
        y_pred = jnp.concatenate([-infs, y_pred[..., 1:]], axis=-1)
        y_pos_2 = jnp.take_along_axis(y_pred, y_true, axis=-1)
    pos_loss = jax.scipy.special.logsumexp(-y_pos_1, axis=-1)
    all_loss = jax.scipy.special.logsumexp(y_pred, axis=-1)
    aux = jax.scipy.special.logsumexp(y_pos_2, axis=-1) - all_loss
    aux = jnp.clip(1.0 - jnp.exp(aux), EPS, 1.0)
    neg_loss = all_loss + jnp.log(aux)
    loss = pos_loss + neg_loss
    return loss.sum(axis=1).mean()


if __name__ == "__main__":
    key = jax.random.PRNGKey(0)

    # Case 1: batch=2, classes=4, token-pair positions N=64 (seq=8), M=8 positive slots, 0 = pad.
    B, C, N, M = 2, 4, 64, 8
    k1, k2, k3, k4 = jax.random.split(key, 4)
    y_pred = jax.random.normal(k1, (B, C, N), dtype=jnp.float32)
    idx = jax.random.randint(k2, (B, C, M), 1, N, dtype=jnp.int32)
    keep = jax.random.bernoulli(k3, 0.5, (B, C, M))
    y_true = jnp.where(keep, idx, 0).astype(jnp.int32)
    y_true = y_true.at[0, 1, :].set(0)       # a row whose labels are all padding
    y_true = y_true.at[0, 2, 0].set(N)       # explicit "appended zero column" index

    loss = jax.block_until_ready(sparse_multilabel_cross_entropy(y_pred, y_true))
    ref = jax.block_until_ready(_reference(y_pred, y_true))
    assert jnp.allclose(loss, ref, rtol=1e-4, atol=1e-4), (loss, ref)

    # mask_zero=False branch
    loss_nm = jax.block_until_ready(
        sparse_multilabel_cross_entropy(y_pred, y_true, mask_zero=False))
    ref_nm = jax.block_until_ready(_reference(y_pred, y_true, mask_zero=False))
    assert jnp.allclose(loss_nm, ref_nm, rtol=1e-4, atol=1e-4), (loss_nm, ref_nm)

    # Case 2: N not a multiple of 128, spanning several column tiles (online accumulation path).
    B2, C2, N2, M2 = 2, 3, 300, 6
    j1, j2, j3 = jax.random.split(k4, 3)
    y_pred2 = jax.random.normal(j1, (B2, C2, N2), dtype=jnp.float32)
    idx2 = jax.random.randint(j2, (B2, C2, M2), 1, N2, dtype=jnp.int32)
    keep2 = jax.random.bernoulli(j3, 0.6, (B2, C2, M2))
    y_true2 = jnp.where(keep2, idx2, 0).astype(jnp.int32)
    loss2 = jax.block_until_ready(
        sparse_multilabel_cross_entropy(y_pred2, y_true2, max_col_block=128))
    ref2 = jax.block_until_ready(_reference(y_pred2, y_true2))
    assert jnp.allclose(loss2, ref2, rtol=1e-4, atol=1e-4), (loss2, ref2)

    print("KERNEL_OK")
</pallas_src>

<mosaic_0001>
module attributes {stable_mosaic.version = 11 : i64} {
  func.func @_smlce_kernel(%arg0: i32, %arg1: i32, %arg2: memref<8x128xf32, #tpu.memory_space<vmem>>, %arg3: memref<8x8xi32, #tpu.memory_space<vmem>>, %arg4: memref<8x1xf32, #tpu.memory_space<vmem>>, %arg5: memref<8x8xf32, #tpu.memory_space<vmem>>, %arg6: memref<8x1xf32, #tpu.memory_space<vmem>>, %arg7: memref<8x1xf32, #tpu.memory_space<vmem>>) attributes {dimension_semantics = [#tpu.dimension_semantics<parallel>, #tpu.dimension_semantics<arbitrary>], iteration_bounds = array<i64: 1, 1>, scalar_prefetch = 0 : i64, scratch_operands = 3 : i64, tpu.core_type = #tpu.core_type<tc>, window_params = [{transform_indices = @transform_0, window_bounds = array<i64: 8, 128>}, {transform_indices = @transform_1, window_bounds = array<i64: 8, 8>}, {transform_indices = @transform_2, window_bounds = array<i64: 8, 1>}]} {
    %c0 = arith.constant 0 : index
    %c0_0 = arith.constant 0 : index
    %0 = vector.load %arg2[%c0, %c0_0] : memref<8x128xf32, #tpu.memory_space<vmem>>, vector<8x128xf32>
    %c0_1 = arith.constant 0 : index
    %c0_2 = arith.constant 0 : index
    %1 = vector.load %arg3[%c0_1, %c0_2] : memref<8x8xi32, #tpu.memory_space<vmem>>, vector<8x8xi32>
    %c0_i32 = arith.constant 0 : i32
    %2 = arith.cmpi eq, %arg1, %c0_i32 : i32
    %3 = arith.extui %2 : i1 to i32
    %c0_i32_3 = arith.constant 0 : i32
    %4 = arith.cmpi ne, %3, %c0_i32_3 : i32
    scf.if %4 {
      %cst_46 = arith.constant -1.000000e+07 : f32
      %114 = vector.broadcast %cst_46 : f32 to vector<8x8xf32>
      %c0_47 = arith.constant 0 : index
      %c0_48 = arith.constant 0 : index
      %115 = vector.load %arg5[%c0_47, %c0_48] : memref<8x8xf32, #tpu.memory_space<vmem>>, vector<8x8xf32>
      tpu.vector_store %arg5[%c0_47, %c0_48], %114 {strides = array<i32>} : memref<8x8xf32, #tpu.memory_space<vmem>>, vector<8x8xf32>,
      %cst_49 = arith.constant -1.000000e+07 : f32
      %116 = vector.broadcast %cst_49 : f32 to vector<8x1xf32>
      %c0_50 = arith.constant 0 : index
      %c0_51 = arith.constant 0 : index
      %117 = vector.load %arg6[%c0_50, %c0_51] : memref<8x1xf32, #tpu.memory_space<vmem>>, vector<8x1xf32>
      tpu.vector_store %arg6[%c0_50, %c0_51], %116 {strides = array<i32>} : memref<8x1xf32, #tpu.memory_space<vmem>>, vector<8x1xf32>,
      %cst_52 = arith.constant 0.000000e+00 : f32
      %118 = vector.broadcast %cst_52 : f32 to vector<8x1xf32>
      %c0_53 = arith.constant 0 : index
      %c0_54 = arith.constant 0 : index
      %119 = vector.load %arg7[%c0_53, %c0_54] : memref<8x1xf32, #tpu.memory_space<vmem>>, vector<8x1xf32>
      tpu.vector_store %arg7[%c0_53, %c0_54], %118 {strides = array<i32>} : memref<8x1xf32, #tpu.memory_space<vmem>>, vector<8x1xf32>,
    } else {
    }
    %c128_i32 = arith.constant 128 : i32
    %5 = arith.muli %arg1, %c128_i32 : i32
    %6 = tpu.iota {dimensions = array<i32: 1>} : vector<8x128xi32>
    %7 = vector.broadcast %5 : i32 to vector<8x128xi32>
    %8 = arith.addi %7, %6 : vector<8x128xi32>
    %c0_i32_4 = arith.constant 0 : i32
    %9 = vector.broadcast %c0_i32_4 : i32 to vector<8x128xi32>
    %10 = arith.cmpi eq, %8, %9 : vector<8x128xi32>
    %cst = arith.constant -1.000000e+07 : f32
    %11 = vector.broadcast %cst : f32 to vector<8x128xf32>
    %12 = arith.select %10, %11, %0 : vector<8x128xi1>, vector<8x128xf32>
    %cst_5 = arith.constant dense<0xFF800000> : vector<8xf32>
    %13 = vector.multi_reduction <maximumf>, %12, %cst_5 [1] : vector<8x128xf32> to vector<8xf32>
    %14 = vector.shape_cast %13 : vector<8xf32> to vector<8x1xf32>
    %c0_6 = arith.constant 0 : index
    %c0_7 = arith.constant 0 : index
    %15 = vector.load %arg6[%c0_6, %c0_7] : memref<8x1xf32, #tpu.memory_space<vmem>>, vector<8x1xf32>
    %16 = arith.maximumf %15, %14 : vector<8x1xf32>
    %17 = vector.broadcast %16 : vector<8x1xf32> to vector<8x128xf32>
    %18 = arith.subf %12, %17 : vector<8x128xf32>
    %19 = math.exp %18 : vector<8x128xf32>
    %cst_8 = arith.constant dense<0.000000e+00> : vector<8xf32>
    %20 = vector.multi_reduction <add>, %19, %cst_8 [1] : vector<8x128xf32> to vector<8xf32>
    %21 = vector.shape_cast %20 : vector<8xf32> to vector<8x1xf32>
    %c0_9 = arith.constant 0 : index
    %c0_10 = arith.constant 0 : index
    %22 = vector.load %arg7[%c0_9, %c0_10] : memref<8x1xf32, #tpu.memory_space<vmem>>, vector<8x1xf32>
    %c0_11 = arith.constant 0 : index
    %c0_12 = arith.constant 0 : index
    %23 = vector.load %arg6[%c0_11, %c0_12] : memref<8x1xf32, #tpu.memory_space<vmem>>, vector<8x1xf32>
    %24 = arith.subf %23, %16 : vector<8x1xf32>
    %25 = math.exp %24 : vector<8x1xf32>
    %26 = arith.mulf %22, %25 : vector<8x1xf32>
    %27 = arith.addf %26, %21 : vector<8x1xf32>
    %c0_13 = arith.constant 0 : index
    %c0_14 = arith.constant 0 : index
    %28 = vector.load %arg7[%c0_13, %c0_14] : memref<8x1xf32, #tpu.memory_space<vmem>>, vector<8x1xf32>
    tpu.vector_store %arg7[%c0_13, %c0_14], %27 {strides = array<i32>} : memref<8x1xf32, #tpu.memory_space<vmem>>, vector<8x1xf32>,
    %c0_15 = arith.constant 0 : index
    %c0_16 = arith.constant 0 : index
    %29 = vector.load %arg6[%c0_15, %c0_16] : memref<8x1xf32, #tpu.memory_space<vmem>>, vector<8x1xf32>
    tpu.vector_store %arg6[%c0_15, %c0_16], %16 {strides = array<i32>} : memref<8x1xf32, #tpu.memory_space<vmem>>, vector<8x1xf32>,
    %c0_17 = arith.constant 0 : index
    %c0_18 = arith.constant 0 : index
    %30 = vector.load %arg5[%c0_17, %c0_18] : memref<8x8xf32, #tpu.memory_space<vmem>>, vector<8x8xf32>
    %31 = vector.extract_strided_slice %1 {offsets = [0, 0], sizes = [8, 1], strides = [1, 1]} : vector<8x8xi32> to vector<8x1xi32>
    %32 = vector.broadcast %31 : vector<8x1xi32> to vector<8x128xi32>
    %33 = arith.cmpi eq, %8, %32 : vector<8x128xi32>
    %cst_19 = arith.constant -1.000000e+07 : f32
    %34 = vector.broadcast %cst_19 : f32 to vector<8x128xf32>
    %35 = arith.select %33, %0, %34 : vector<8x128xi1>, vector<8x128xf32>
    %cst_20 = arith.constant dense<0xFF800000> : vector<8xf32>
    %36 = vector.multi_reduction <maximumf>, %35, %cst_20 [1] : vector<8x128xf32> to vector<8xf32>
    %37 = vector.shape_cast %36 : vector<8xf32> to vector<8x1xf32>
    %38 = vector.extract_strided_slice %30 {offsets = [0, 0], sizes = [8, 1], strides = [1, 1]} : vector<8x8xf32> to vector<8x1xf32>
    %39 = arith.maximumf %38, %37 : vector<8x1xf32>
    %c0_21 = arith.constant 0 : index
    %c0_22 = arith.constant 0 : index
    %40 = vector.load %arg5[%c0_21, %c0_22] : memref<8x8xf32, #tpu.memory_space<vmem>>, vector<8x1xf32>
    tpu.vector_store %arg5[%c0_21, %c0_22], %39 {strides = array<i32>} : memref<8x8xf32, #tpu.memory_space<vmem>>, vector<8x1xf32>,
    %41 = vector.extract_strided_slice %1 {offsets = [0, 1], sizes = [8, 1], strides = [1, 1]} : vector<8x8xi32> to vector<8x1xi32>
    %42 = vector.broadcast %41 : vector<8x1xi32> to vector<8x128xi32>
    %43 = arith.cmpi eq, %8, %42 : vector<8x128xi32>
    %cst_23 = arith.constant -1.000000e+07 : f32
    %44 = vector.broadcast %cst_23 : f32 to vector<8x128xf32>
    %45 = arith.select %43, %0, %44 : vector<8x128xi1>, vector<8x128xf32>
    %cst_24 = arith.constant dense<0xFF800000> : vector<8xf32>
    %46 = vector.multi_reduction <maximumf>, %45, %cst_24 [1] : vector<8x128xf32> to vector<8xf32>
    %47 = vector.shape_cast %46 : vector<8xf32> to vector<8x1xf32>
    %48 = vector.extract_strided_slice %30 {offsets = [0, 1], sizes = [8, 1], strides = [1, 1]} : vector<8x8xf32> to vector<8x1xf32>
    %49 = arith.maximumf %48, %47 : vector<8x1xf32>
    %c0_25 = arith.constant 0 : index
    %c1 = arith.constant 1 : index
    %50 = vector.load %arg5[%c0_25, %c1] : memref<8x8xf32, #tpu.memory_space<vmem>>, vector<8x1xf32>
    tpu.vector_store %arg5[%c0_25, %c1], %49 {strides = array<i32>} : memref<8x8xf32, #tpu.memory_space<vmem>>, vector<8x1xf32>,
    %51 = vector.extract_strided_slice %1 {offsets = [0, 2], sizes = [8, 1], strides = [1, 1]} : vector<8x8xi32> to vector<8x1xi32>
    %52 = vector.broadcast %51 : vector<8x1xi32> to vector<8x128xi32>
    %53 = arith.cmpi eq, %8, %52 : vector<8x128xi32>
    %cst_26 = arith.constant -1.000000e+07 : f32
    %54 = vector.broadcast %cst_26 : f32 to vector<8x128xf32>
    %55 = arith.select %53, %0, %54 : vector<8x128xi1>, vector<8x128xf32>
    %cst_27 = arith.constant dense<0xFF800000> : vector<8xf32>
    %56 = vector.multi_reduction <maximumf>, %55, %cst_27 [1] : vector<8x128xf32> to vector<8xf32>
    %57 = vector.shape_cast %56 : vector<8xf32> to vector<8x1xf32>
    %58 = vector.extract_strided_slice %30 {offsets = [0, 2], sizes = [8, 1], strides = [1, 1]} : vector<8x8xf32> to vector<8x1xf32>
    %59 = arith.maximumf %58, %57 : vector<8x1xf32>
    %c0_28 = arith.constant 0 : index
    %c2 = arith.constant 2 : index
    %60 = vector.load %arg5[%c0_28, %c2] : memref<8x8xf32, #tpu.memory_space<vmem>>, vector<8x1xf32>
    tpu.vector_store %arg5[%c0_28, %c2], %59 {strides = array<i32>} : memref<8x8xf32, #tpu.memory_space<vmem>>, vector<8x1xf32>,
    %61 = vector.extract_strided_slice %1 {offsets = [0, 3], sizes = [8, 1], strides = [1, 1]} : vector<8x8xi32> to vector<8x1xi32>
    %62 = vector.broadcast %61 : vector<8x1xi32> to vector<8x128xi32>
    %63 = arith.cmpi eq, %8, %62 : vector<8x128xi32>
    %cst_29 = arith.constant -1.000000e+07 : f32
    %64 = vector.broadcast %cst_29 : f32 to vector<8x128xf32>
    %65 = arith.select %63, %0, %64 : vector<8x128xi1>, vector<8x128xf32>
    %cst_30 = arith.constant dense<0xFF800000> : vector<8xf32>
    %66 = vector.multi_reduction <maximumf>, %65, %cst_30 [1] : vector<8x128xf32> to vector<8xf32>
    %67 = vector.shape_cast %66 : vector<8xf32> to vector<8x1xf32>
    %68 = vector.extract_strided_slice %30 {offsets = [0, 3], sizes = [8, 1], strides = [1, 1]} : vector<8x8xf32> to vector<8x1xf32>
    %69 = arith.maximumf %68, %67 : vector<8x1xf32>
    %c0_31 = arith.constant 0 : index
    %c3 = arith.constant 3 : index
    %70 = vector.load %arg5[%c0_31, %c3] : memref<8x8xf32, #tpu.memory_space<vmem>>, vector<8x1xf32>
    tpu.vector_store %arg5[%c0_31, %c3], %69 {strides = array<i32>} : memref<8x8xf32, #tpu.memory_space<vmem>>, vector<8x1xf32>,
    %71 = vector.extract_strided_slice %1 {offsets = [0, 4], sizes = [8, 1], strides = [1, 1]} : vector<8x8xi32> to vector<8x1xi32>
    %72 = vector.broadcast %71 : vector<8x1xi32> to vector<8x128xi32>
    %73 = arith.cmpi eq, %8, %72 : vector<8x128xi32>
    %cst_32 = arith.constant -1.000000e+07 : f32
    %74 = vector.broadcast %cst_32 : f32 to vector<8x128xf32>
    %75 = arith.select %73, %0, %74 : vector<8x128xi1>, vector<8x128xf32>
    %cst_33 = arith.constant dense<0xFF800000> : vector<8xf32>
    %76 = vector.multi_reduction <maximumf>, %75, %cst_33 [1] : vector<8x128xf32> to vector<8xf32>
    %77 = vector.shape_cast %76 : vector<8xf32> to vector<8x1xf32>
    %78 = vector.extract_strided_slice %30 {offsets = [0, 4], sizes = [8, 1], strides = [1, 1]} : vector<8x8xf32> to vector<8x1xf32>
    %79 = arith.maximumf %78, %77 : vector<8x1xf32>
    %c0_34 = arith.constant 0 : index
    %c4 = arith.constant 4 : index
    %80 = vector.load %arg5[%c0_34, %c4] : memref<8x8xf32, #tpu.memory_space<vmem>>, vector<8x1xf32>
    tpu.vector_store %arg5[%c0_34, %c4], %79 {strides = array<i32>} : memref<8x8xf32, #tpu.memory_space<vmem>>, vector<8x1xf32>,
    %81 = vector.extract_strided_slice %1 {offsets = [0, 5], sizes = [8, 1], strides = [1, 1]} : vector<8x8xi32> to vector<8x1xi32>
    %82 = vector.broadcast %81 : vector<8x1xi32> to vector<8x128xi32>
    %83 = arith.cmpi eq, %8, %82 : vector<8x128xi32>
    %cst_35 = arith.constant -1.000000e+07 : f32
    %84 = vector.broadcast %cst_35 : f32 to vector<8x128xf32>
    %85 = arith.select %83, %0, %84 : vector<8x128xi1>, vector<8x128xf32>
    %cst_36 = arith.constant dense<0xFF800000> : vector<8xf32>
    %86 = vector.multi_reduction <maximumf>, %85, %cst_36 [1] : vector<8x128xf32> to vector<8xf32>
    %87 = vector.shape_cast %86 : vector<8xf32> to vector<8x1xf32>
    %88 = vector.extract_strided_slice %30 {offsets = [0, 5], sizes = [8, 1], strides = [1, 1]} : vector<8x8xf32> to vector<8x1xf32>
    %89 = arith.maximumf %88, %87 : vector<8x1xf32>
    %c0_37 = arith.constant 0 : index
    %c5 = arith.constant 5 : index
    %90 = vector.load %arg5[%c0_37, %c5] : memref<8x8xf32, #tpu.memory_space<vmem>>, vector<8x1xf32>
    tpu.vector_store %arg5[%c0_37, %c5], %89 {strides = array<i32>} : memref<8x8xf32, #tpu.memory_space<vmem>>, vector<8x1xf32>,
    %91 = vector.extract_strided_slice %1 {offsets = [0, 6], sizes = [8, 1], strides = [1, 1]} : vector<8x8xi32> to vector<8x1xi32>
    %92 = vector.broadcast %91 : vector<8x1xi32> to vector<8x128xi32>
    %93 = arith.cmpi eq, %8, %92 : vector<8x128xi32>
    %cst_38 = arith.constant -1.000000e+07 : f32
    %94 = vector.broadcast %cst_38 : f32 to vector<8x128xf32>
    %95 = arith.select %93, %0, %94 : vector<8x128xi1>, vector<8x128xf32>
    %cst_39 = arith.constant dense<0xFF800000> : vector<8xf32>
    %96 = vector.multi_reduction <maximumf>, %95, %cst_39 [1] : vector<8x128xf32> to vector<8xf32>
    %97 = vector.shape_cast %96 : vector<8xf32> to vector<8x1xf32>
    %98 = vector.extract_strided_slice %30 {offsets = [0, 6], sizes = [8, 1], strides = [1, 1]} : vector<8x8xf32> to vector<8x1xf32>
    %99 = arith.maximumf %98, %97 : vector<8x1xf32>
    %c0_40 = arith.constant 0 : index
    %c6 = arith.constant 6 : index
    %100 = vector.load %arg5[%c0_40, %c6] : memref<8x8xf32, #tpu.memory_space<vmem>>, vector<8x1xf32>
    tpu.vector_store %arg5[%c0_40, %c6], %99 {strides = array<i32>} : memref<8x8xf32, #tpu.memory_space<vmem>>, vector<8x1xf32>,
    %101 = vector.extract_strided_slice %1 {offsets = [0, 7], sizes = [8, 1], strides = [1, 1]} : vector<8x8xi32> to vector<8x1xi32>
    %102 = vector.broadcast %101 : vector<8x1xi32> to vector<8x128xi32>
    %103 = arith.cmpi eq, %8, %102 : vector<8x128xi32>
    %cst_41 = arith.constant -1.000000e+07 : f32
    %104 = vector.broadcast %cst_41 : f32 to vector<8x128xf32>
    %105 = arith.select %103, %0, %104 : vector<8x128xi1>, vector<8x128xf32>
    %cst_42 = arith.constant dense<0xFF800000> : vector<8xf32>
    %106 = vector.multi_reduction <maximumf>, %105, %cst_42 [1] : vector<8x128xf32> to vector<8xf32>
    %107 = vector.shape_cast %106 : vector<8xf32> to vector<8x1xf32>
    %108 = vector.extract_strided_slice %30 {offsets = [0, 7], sizes = [8, 1], strides = [1, 1]} : vector<8x8xf32> to vector<8x1xf32>
    %109 = arith.maximumf %108, %107 : vector<8x1xf32>
    %c0_43 = arith.constant 0 : index
    %c7 = arith.constant 7 : index
    %110 = vector.load %arg5[%c0_43, %c7] : memref<8x8xf32, #tpu.memory_space<vmem>>, vector<8x1xf32>
    tpu.vector_store %arg5[%c0_43, %c7], %109 {strides = array<i32>} : memref<8x8xf32, #tpu.memory_space<vmem>>, vector<8x1xf32>,
    %c0_i32_44 = arith.constant 0 : i32
    %111 = arith.cmpi eq, %arg1, %c0_i32_44 : i32
    %112 = arith.extui %111 : i1 to i32
    %c0_i32_45 = arith.constant 0 : i32
    %113 = arith.cmpi ne, %112, %c0_i32_45 : i32
    scf.if %113 {
      %c0_46 = arith.constant 0 : index
      %c0_47 = arith.constant 0 : index
      %114 = vector.load %arg5[%c0_46, %c0_47] : memref<8x8xf32, #tpu.memory_space<vmem>>, vector<8x8xf32>
      %c64_i32 = arith.constant 64 : i32
      %115 = vector.broadcast %c64_i32 : i32 to vector<8x8xi32>
      %116 = arith.cmpi eq, %1, %115 : vector<8x8xi32>
      %cst_48 = arith.constant 0.000000e+00 : f32
      %117 = vector.broadcast %cst_48 : f32 to vector<8x8xf32>
      %118 = arith.select %116, %117, %114 : vector<8x8xi1>, vector<8x8xf32>
      %c0_i32_49 = arith.constant 0 : i32
      %119 = vector.broadcast %c0_i32_49 : i32 to vector<8x8xi32>
      %120 = arith.cmpi eq, %1, %119 : vector<8x8xi32>
      %cst_50 = arith.constant 1.000000e+07 : f32
      %121 = vector.broadcast %cst_50 : f32 to vector<8x8xf32>
      %122 = arith.select %120, %121, %118 : vector<8x8xi1>, vector<8x8xf32>
      %cst_51 = arith.constant -1.000000e+07 : f32
      %123 = vector.broadcast %cst_51 : f32 to vector<8x8xf32>
      %124 = arith.select %120, %123, %118 : vector<8x8xi1>, vector<8x8xf32>
      %c0_52 = arith.constant 0 : index
      %c0_53 = arith.constant 0 : index
      %125 = vector.load %arg6[%c0_52, %c0_53] : memref<8x1xf32, #tpu.memory_space<vmem>>, vector<8x1xf32>
      %c0_54 = arith.constant 0 : index
      %c0_55 = arith.constant 0 : index
      %126 = vector.load %arg7[%c0_54, %c0_55] : memref<8x1xf32, #tpu.memory_space<vmem>>, vector<8x1xf32>
      %cst_56 = arith.constant 0.000000e+00 : f32
      %127 = vector.broadcast %cst_56 : f32 to vector<8x1xf32>
      %128 = arith.maximumf %125, %127 : vector<8x1xf32>
      %129 = arith.subf %125, %128 : vector<8x1xf32>
      %130 = math.exp %129 : vector<8x1xf32>
      %131 = arith.mulf %126, %130 : vector<8x1xf32>
      %cst_57 = arith.constant 0.000000e+00 : f32
      %132 = vector.broadcast %cst_57 : f32 to vector<8x1xf32>
      %133 = arith.subf %132, %128 : vector<8x1xf32>
      %134 = math.exp %133 : vector<8x1xf32>
      %135 = arith.addf %131, %134 : vector<8x1xf32>
      %136 = math.log %135 : vector<8x1xf32>
      %137 = arith.addf %128, %136 : vector<8x1xf32>
      %cst_58 = arith.constant 0.000000e+00 : f32
      %138 = vector.broadcast %cst_58 : f32 to vector<8x8xf32>
      %139 = arith.subf %138, %122 : vector<8x8xf32>
      %cst_59 = arith.constant dense<0xFF800000> : vector<8xf32>
      %140 = vector.multi_reduction <maximumf>, %139, %cst_59 [1] : vector<8x8xf32> to vector<8xf32>
      %141 = vector.shape_cast %140 : vector<8xf32> to vector<8x1xf32>
      %cst_60 = arith.constant 0.000000e+00 : f32
      %142 = vector.broadcast %cst_60 : f32 to vector<8x1xf32>
      %143 = arith.maximumf %141, %142 : vector<8x1xf32>
      %cst_61 = arith.constant 0.000000e+00 : f32
      %144 = vector.broadcast %cst_61 : f32 to vector<8x8xf32>
      %145 = arith.subf %144, %122 : vector<8x8xf32>
      %146 = vector.broadcast %143 : vector<8x1xf32> to vector<8x8xf32>
      %147 = arith.subf %145, %146 : vector<8x8xf32>
      %148 = math.exp %147 : vector<8x8xf32>
      %cst_62 = arith.constant dense<0.000000e+00> : vector<8xf32>
      %149 = vector.multi_reduction <add>, %148, %cst_62 [1] : vector<8x8xf32> to vector<8xf32>
      %150 = vector.shape_cast %149 : vector<8xf32> to vector<8x1xf32>
      %cst_63 = arith.constant 0.000000e+00 : f32
      %151 = vector.broadcast %cst_63 : f32 to vector<8x1xf32>
      %152 = arith.subf %151, %143 : vector<8x1xf32>
      %153 = math.exp %152 : vector<8x1xf32>
      %154 = arith.addf %150, %153 : vector<8x1xf32>
      %155 = math.log %154 : vector<8x1xf32>
      %156 = arith.addf %143, %155 : vector<8x1xf32>
      %cst_64 = arith.constant dense<0xFF800000> : vector<8xf32>
      %157 = vector.multi_reduction <maximumf>, %124, %cst_64 [1] : vector<8x8xf32> to vector<8xf32>
      %158 = vector.shape_cast %157 : vector<8xf32> to vector<8x1xf32>
      %159 = vector.broadcast %158 : vector<8x1xf32> to vector<8x8xf32>
      %160 = arith.subf %124, %159 : vector<8x8xf32>
      %161 = math.exp %160 : vector<8x8xf32>
      %cst_65 = arith.constant dense<0.000000e+00> : vector<8xf32>
      %162 = vector.multi_reduction <add>, %161, %cst_65 [1] : vector<8x8xf32> to vector<8xf32>
      %163 = vector.shape_cast %162 : vector<8xf32> to vector<8x1xf32>
      %164 = math.log %163 : vector<8x1xf32>
      %165 = arith.addf %158, %164 : vector<8x1xf32>
      %166 = arith.subf %165, %137 : vector<8x1xf32>
      %167 = math.exp %166 : vector<8x1xf32>
      %cst_66 = arith.constant 1.000000e+00 : f32
      %168 = vector.broadcast %cst_66 : f32 to vector<8x1xf32>
      %169 = arith.subf %168, %167 : vector<8x1xf32>
      %cst_67 = arith.constant 1.000000e-07 : f32
      %cst_68 = arith.constant 1.000000e+00 : f32
      %170 = vector.broadcast %cst_67 : f32 to vector<8x1xf32>
      %171 = arith.maximumf %170, %169 : vector<8x1xf32>
      %172 = vector.broadcast %cst_68 : f32 to vector<8x1xf32>
      %173 = arith.minimumf %172, %171 : vector<8x1xf32>
      %174 = math.log %173 : vector<8x1xf32>
      %175 = arith.addf %137, %174 : vector<8x1xf32>
      %176 = arith.addf %156, %175 : vector<8x1xf32>
      %c0_69 = arith.constant 0 : index
      %c0_70 = arith.constant 0 : index
      %177 = vector.load %arg4[%c0_69, %c0_70] : memref<8x1xf32, #tpu.memory_space<vmem>>, vector<8x1xf32>
      tpu.vector_store %arg4[%c0_69, %c0_70], %176 {strides = array<i32>} : memref<8x1xf32, #tpu.memory_space<vmem>>, vector<8x1xf32>,
    } else {
    }
    return
  }
  func.func @transform_0(%arg0: i32, %arg1: i32) -> (i32, i32) {
    %c0_i32 = arith.constant 0 : i32
    return %arg0, %arg1 : i32, i32
  }
  func.func @transform_1(%arg0: i32, %arg1: i32) -> (i32, i32) {
    %c0_i32 = arith.constant 0 : i32
    %c0_i32_0 = arith.constant 0 : i32
    return %arg0, %c0_i32 : i32, i32
  }
  func.func @transform_2(%arg0: i32, %arg1: i32) -> (i32, i32) {
    %c0_i32 = arith.constant 0 : i32
    %c0_i32_0 = arith.constant 0 : i32
    return %arg0, %c0_i32 : i32, i32
  }
}

</mosaic_0001>

<bundles_post_ra>
// kernel: tpu_custom_call.1
= control target key start
LH: loop header
LB: loop body
LE: loop exit
PB: predicated region body
PF: predicated region fallthrough
CT: control target
= control target key end

     0   :  { %7 = vsyncpa [#allocation6], 0  ;;  %s402_s0 = inlined_call_operand.hbm [shape: f32[8,128], index: 0, kind: input, shape index: {}]   ;;  %s403_s1 = inlined_call_operand.hbm [shape: s32[8,8], index: 1, kind: input, shape index: {}]   ;;  %s404_s2 = inlined_call_operand.vmem [shape: f32[8,1], index: 2, kind: output, shape index: {}]  }
   0x1   :  { %8 = vsyncpa [#allocation8], 0  ;;  %s321_s9 = smov [#allocation5]   ;;  %s322_s11 = smov [#allocation7]  }
   0x2   :  { %s15_s10 = sshll.u32 %s321_s9, 4  ;;  %s25_s12 = sshll.u32 %s322_s11, 4  ;;  %s16_s10 = int_to_ptr.vmem [resolvable:$true] %s15_s10  ;;  %s26_s12 = int_to_ptr.vmem [resolvable:$true] %s25_s12 }
   0x3   :  { %s273_s15 = scalar_lea.hbm %s402_s0, 128 }
   0x4   :  { %p274_p0 = scmp.ne.s32.totalorder %s402_s0, %s273_s15  ;;  %p277_p1 = scmp.lt.u32.totalorder %s273_s15, %s402_s0 }
   0x6   :  { %p279_p2 = pnand %p277_p1, %p274_p0 }
   0x8   :  { %282 = shalt.err (!%p279_p2)
}
   0x9   :  { %s283_s20 = scalar_lea.vmem %s16_s10, 128  ;;  %p288_p4 = scmp.lt.s32.totalorder %s16_s10, %s16_s10 }
   0xa   :  { %p284_p3 = scmp.ne.s32.totalorder %s16_s10, %s283_s20  ;;  %p289_p5 = scmp.lt.s32.totalorder %s283_s20, %s283_s20 }
   0xc   :  { %p290_p6 = por %p289_p5, %p288_p4 }
   0xe   :  { %p291_p7 = pnand %p290_p6, %p284_p3 }
  0x10   :  { %294 = shalt.err (!%p291_p7)
}
  0x11   :  { %18 = dma.hbm_to_vmem [thread:$0]  %s402_s0, 128, %s16_s10, [#allocation6]  }
  0x12   :  { %s295_s25 = scalar_lea.hbm %s403_s1, 128 }
  0x13   :  { %p296_p8 = scmp.ne.s32.totalorder %s403_s1, %s295_s25  ;;  %p299_p9 = scmp.lt.u32.totalorder %s295_s25, %s403_s1 }
  0x15   :  { %p301_p10 = pnand %p299_p9, %p296_p8 }
  0x17   :  { %304 = shalt.err (!%p301_p10)
}
  0x18   :  { %s305_s30 = scalar_lea.vmem %s26_s12, 128  ;;  %p310_p12 = scmp.lt.s32.totalorder %s26_s12, %s26_s12 }
  0x19   :  { %p306_p11 = scmp.ne.s32.totalorder %s26_s12, %s305_s30  ;;  %p311_p13 = scmp.lt.s32.totalorder %s305_s30, %s305_s30 }
  0x1b   :  { %p312_p0 = por %p311_p13, %p310_p12 }
  0x1d   :  { %p313_p1 = pnand %p312_p0, %p306_p11 }
  0x1f   :  { %316 = shalt.err (!%p313_p1)
}
  0x20   :  { %28 = dma.hbm_to_vmem [thread:$0]  %s403_s1, 128, %s26_s12, [#allocation8]  }
  0x21   :  { %317 = dma.done.wait [#allocation6], 128  }
  0x22   :  { %318 = vsyncadd [#allocation6], 4294967168 }
  0x23   :  { %319 = dma.done.wait [#allocation8], 128  }
  0x24   :  { %320 = vsyncadd [#allocation8], 4294967168  ;;  %v323_v0 = vmov 0   ;;  %v324_v1 = vmov 2   ;;  %v372_v2 = vld [vmem:[#allocation7] sm:$0xff]  ;;  %v325_v3 = vmov 1   ;;  %v47_v10 = vlaneseq }
  0x25   :  { %239 = vset.pattern.permute.xlu0 %v323_v0  ;;  %241 = vset.pattern.permute.xlu1 %v324_v1  ;;  %v326_v4 = vmov 3   ;;  %v327_v5 = vmov 5   ;;  %v328_v6 = vmov 4   ;;  %v329_v7 = vmov 6   ;;  %v35_v12 = vld [vmem:[#allocation5] sm:$0xff] }
  0x26   :  { %78 = vperm.xlu0 %239, %v372_v2   ;;  %97 = vperm.xlu1 %241, %v372_v2   ;;  %v330_v8 = vmov 7   ;;  %vm43_vm0 = vcmask 7168   ;;  %v331_v9 = vmov -10000000.0   ;;  %v48_v11 = vand.u32 127, %v47_v10 }
  0x27   :  { %44 = vst.msk [vmem:[#allocation3] sm:$0xff] %vm43_vm0, %v331_v9  ;;  %v332_v14 = vmov 0.0   ;;  %vm41_vm2 = vcmask 64512   ;;  %vm94_vm11 = vcmask 15368   ;;  %vm104_vm12 = vcmask 23568  }
  0x28   :  { %vm51_vm1 = vcmp.eq.s32.totalorder %v48_v11, 0  ;;  %45 = vst.msk [vmem:[#allocation4] sm:$0xff] %vm43_vm0, %v332_v14  ;;  %vm114_vm13 = vcmask 31768   ;;  %vm124_vm14 = vcmask 39968   ;;  %vm134_vm15 = vcmask 48168  }
  0x29   :  { %v383_v13 = vsel %vm51_vm1, -10000000.0, %v35_v12  ;;  %42 = vst.msk [vmem:[#allocation2] sm:$0xff] %vm41_vm2, %v331_v9  ;;  %vm144_vm1 = vcmask 56368  }
  0x2a   :  { %240 = vset.pattern.permute.xlu0 %v325_v3  ;;  %242 = vset.pattern.permute.xlu1 %v326_v4 }
  0x2b   :  { %87 = vperm.xlu0 %240, %v372_v2   ;;  %107 = vperm.xlu1 %242, %v372_v2  }
  0x2e   :  { %v55_v30 = vld [vmem:[#allocation3] sm:$0xff] }
  0x2f   :  { %244 = vset.pattern.permute.xlu0 %v327_v5  ;;  %243 = vset.pattern.permute.xlu1 %v328_v6  ;;  %v67_v1 = vld [vmem:[#allocation4] sm:$0xff] }
  0x30   :  { %127 = vperm.xlu0 %244, %v372_v2   ;;  %117 = vperm.xlu1 %243, %v372_v2   ;;  %v76_v35 = vld [vmem:[#allocation2] sm:$0xff] }
  0x34   :  { %245 = vset.pattern.permute.xlu1 %v329_v7  ;;  %248 = vset.pattern.permute.xlu0 %v330_v8 }
  0x35   :  { %137 = vperm.xlu1 %245, %v372_v2  }
  0x39   :  { %246 = vset.pattern.permute.xlu1 %v330_v8 }
  0x3a   :  { %147 = vperm.xlu1 %246, %v372_v2  }
  0x3e   :  { %247 = vset.pattern.permute.xlu1 %v323_v0 }
  0x4f   :  { %53 = vmax.xlane.f32.xlu0 %v383_v13 }
  0xa5   :  { %v79_v15 = vpop.permute.xlu0 %78  ;;  %v98_v16 = vpop.permute.xlu1 %97 }
  0xa6   :  { %vm80_vm3 = vcmp.eq.s32.totalorder %v48_v11, %v79_v15  ;;  %vm99_vm5 = vcmp.eq.s32.totalorder %v48_v11, %v98_v16 }
  0xa7   :  { %v81_v17 = vsel %vm80_vm3, %v35_v12, -10000000.0  ;;  %v100_v21 = vsel %vm99_vm5, %v35_v12, -10000000.0  ;;  %vm154_vm3 = vcmask 64568   ;;  %vm162_vm5 = vcmp.eq.s32.totalorder %v372_v2, 0 }
  0xa8   :  { %82 = vmax.xlane.f32.xlu1 %v81_v17 }
  0xaa   :  { %v88_v18 = vpop.permute.xlu0 %87  ;;  %v108_v19 = vpop.permute.xlu1 %107 }
  0xab   :  { %vm89_vm4 = vcmp.eq.s32.totalorder %v48_v11, %v88_v18  ;;  %vm109_vm6 = vcmp.eq.s32.totalorder %v48_v11, %v108_v19 }
  0xac   :  { %v90_v20 = vsel %vm89_vm4, %v35_v12, -10000000.0  ;;  %v110_v25 = vsel %vm109_vm6, %v35_v12, -10000000.0  ;;  %vm160_vm4 = vcmp.eq.s32.totalorder %v372_v2, 64 }
  0xad   :  { %91 = vmax.xlane.f32.xlu0 %v90_v20 }
  0xaf   :  { %v118_v22 = vpop.permute.xlu1 %117  ;;  %v128_v24 = vpop.permute.xlu0 %127 }
  0xb0   :  { %vm119_vm7 = vcmp.eq.s32.totalorder %v48_v11, %v118_v22  ;;  %vm129_vm8 = vcmp.eq.s32.totalorder %v48_v11, %v128_v24 }
  0xb1   :  { %101 = vmax.xlane.f32.xlu0 %v100_v21  ;;  %v120_v23 = vsel %vm119_vm7, %v35_v12, -10000000.0  ;;  %v130_v27 = vsel %vm129_vm8, %v35_v12, -10000000.0 }
  0xb2   :  { %121 = vmax.xlane.f32.xlu1 %v120_v23 }
  0xb4   :  { %v138_v26 = vpop.permute.xlu1 %137 }
  0xb5   :  { %111 = vmax.xlane.f32.xlu0 %v110_v25  ;;  %vm139_vm10 = vcmp.eq.s32.totalorder %v48_v11, %v138_v26 }
  0xb6   :  { %v140_v34 = vsel %vm139_vm10, %v35_v12, -10000000.0 }
  0xb9   :  { %131 = vmax.xlane.f32.xlu0 %v130_v27  ;;  %v148_v28 = vpop.permute.xlu1 %147 }
  0xba   :  { %vm149_vm9 = vcmp.eq.s32.totalorder %v48_v11, %v148_v28 }
  0xbb   :  { %v150_v29 = vsel %vm149_vm9, %v35_v12, -10000000.0 }
  0xbd   :  { %151 = vmax.xlane.f32.xlu0 %v150_v29 }
  0xdc   :  { %v54_v31 = vpop.xlane.xlu0 %53 }
  0xdd   :  { %v56_v32 = vmax.f32 %v55_v30, %v54_v31 }
  0xdf   :  { %v68_v33 = vsub.f32 %v55_v30, %v56_v32  ;;  %75 = vst.msk [vmem:[#allocation3] sm:$0xff] %vm43_vm0, %v56_v32  ;;  %59 = vperm.xlu1 %247, %v56_v32  }
  0xe1   :  { %v69_v63 = vmul.f32 1.442695, %v68_v33 }
  0xe6   :  { %v165_v16 = vld [vmem:[#allocation3] sm:$0xff] }
  0xe7   :  { %v167_v17 = vmax.f32 %v165_v16, 0.0 }
  0xe9   :  { %v168_v18 = vsub.f32 %v165_v16, %v167_v17  ;;  %v172_v20 = vsub.f32 0.0, %v167_v17 }
  0xeb   :  { %v169_v19 = vmul.f32 1.442695, %v168_v18  ;;  %v173_v21 = vmul.f32 1.442695, %v172_v20 }
 0x103   :  { %141 = vmax.xlane.f32.xlu1 %v140_v34 }
 0x135   :  { %v83_v36 = vpop.xlane.xlu1 %82 }
 0x136   :  { %v84_v37 = vmax.f32 %v76_v35, %v83_v36 }
 0x138   :  { %85 = vst.msk [vmem:[#allocation2] sm:$0xff] %vm43_vm0, %v84_v37 }
 0x13a   :  { %v92_v38 = vpop.xlane.xlu0 %91 }
 0x13b   :  { %v93_v39 = vmax.f32 %v76_v35, %v92_v38 }
 0x13d   :  { %95 = vst.msk [vmem:[#allocation2] sm:$0xff] %vm94_vm11, %v93_v39 }
 0x13e   :  { %v102_v40 = vpop.xlane.xlu0 %101 }
 0x13f   :  { %v103_v41 = vmax.f32 %v76_v35, %v102_v40  ;;  %v122_v42 = vpop.xlane.xlu1 %121 }
 0x140   :  { %v123_v44 = vmax.f32 %v76_v35, %v122_v42 }
 0x141   :  { %105 = vst.msk [vmem:[#allocation2] sm:$0xff] %vm104_vm12, %v103_v41 }
 0x142   :  { %v112_v43 = vpop.xlane.xlu0 %111 }
 0x143   :  { %v113_v45 = vmax.f32 %v76_v35, %v112_v43 }
 0x145   :  { %115 = vst.msk [vmem:[#allocation2] sm:$0xff] %vm114_vm13, %v113_v45 }
 0x146   :  { %125 = vst.msk [vmem:[#allocation2] sm:$0xff] %vm124_vm14, %v123_v44  ;;  %v132_v46 = vpop.xlane.xlu0 %131 }
 0x147   :  { %v133_v47 = vmax.f32 %v76_v35, %v132_v46 }
 0x149   :  { %135 = vst.msk [vmem:[#allocation2] sm:$0xff] %vm134_vm15, %v133_v47 }
 0x14a   :  { %v152_v52 = vpop.xlane.xlu0 %151 }
 0x14b   :  { %v153_v54 = vmax.f32 %v76_v35, %v152_v52 }
 0x15e   :  { %v60_v48 = vpop.permute.xlu1 %59 }
 0x15f   :  { %v62_v49 = vsub.f32 %v383_v13, %v60_v48 }
 0x161   :  { %v63_v50 = vmul.f32 1.442695, %v62_v49 }
 0x163   :  { %249 = vpow2.f32 %v63_v50 }
 0x164   :  { %251 = vpow2.f32 %v69_v63 }
 0x16d   :  { %v250_v51 = vpop.eup %249 }
 0x16e   :  { %65 = vadd.xlane.f32.xlu1 %v250_v51  ;;  %v252_v0 = vpop.eup %251 }
 0x16f   :  { %v71_v3 = vmul.f32 %v252_v0, %v67_v1 }
 0x190   :  { %v142_v53 = vpop.xlane.xlu1 %141 }
 0x191   :  { %v143_v55 = vmax.f32 %v76_v35, %v142_v53 }
 0x193   :  { %145 = vst.msk [vmem:[#allocation2] sm:$0xff] %vm144_vm1, %v143_v55 }
 0x194   :  { %155 = vst.msk [vmem:[#allocation2] sm:$0xff] %vm154_vm3, %v153_v54 }
 0x19b   :  { %v159_v56 = vld [vmem:[#allocation2] sm:$0xff] }
 0x19c   :  { %v161_v57 = vsel %vm160_vm4, 0.0, %v159_v56 }
 0x19d   :  { %v163_v58 = vsel %vm162_vm5, 10000000.0, %v161_v57  ;;  %v164_v61 = vsel %vm162_vm5, -10000000.0, %v161_v57 }
 0x19e   :  { %v179_v59 = vsub.f32 0.0, %v163_v58  ;;  %v198_v62 = vsel %vm41_vm2, %v164_v61, -inf }
 0x1a0   :  { %v181_v60 = vsel %vm41_vm2, %v179_v59, -inf }
 0x1a1   :  { %182 = vmax.xlane.f32.xlu0 %v181_v60 }
 0x1a5   :  { %199 = vmax.xlane.f32.xlu0 %v198_v62 }
 0x1fb   :  { %v66_v4 = vpop.xlane.xlu1 %65 }
 0x1fc   :  { %v72_v5 = vadd.f32 %v71_v3, %v66_v4 }
 0x1fe   :  { %74 = vst.msk [vmem:[#allocation4] sm:$0xff] %vm43_vm0, %v72_v5 }
 0x205   :  { %v166_v22 = vld [vmem:[#allocation4] sm:$0xff] }
 0x22e   :  { %v183_v2 = vpop.xlane.xlu0 %182 }
 0x22f   :  { %v184_v6 = vmax.f32 %v183_v2, 0.0 }
 0x231   :  { %v185_v7 = vsub.f32 %v179_v59, %v184_v6  ;;  %v191_v30 = vsub.f32 0.0, %v184_v6 }
 0x232   :  { %v200_v8 = vpop.xlane.xlu0 %199 }
 0x233   :  { %v186_v9 = vmul.f32 1.442695, %v185_v7  ;;  %v201_v10 = vsub.f32 %v164_v61, %v200_v8  ;;  %v192_v34 = vmul.f32 1.442695, %v191_v30 }
 0x235   :  { %253 = vpow2.f32 %v186_v9  ;;  %v202_v11 = vmul.f32 1.442695, %v201_v10 }
 0x237   :  { %255 = vpow2.f32 %v202_v11 }
 0x238   :  { %257 = vpow2.f32 %v169_v19 }
 0x239   :  { %259 = vpow2.f32 %v173_v21 }
 0x23f   :  { %v254_v12 = vpop.eup %253 }
 0x240   :  { %v188_v13 = vsel %vm41_vm2, %v254_v12, 0.0 }
 0x241   :  { %v256_v14 = vpop.eup %255  ;;  %189 = vadd.xlane.f32.xlu1 %v188_v13 }
 0x242   :  { %v204_v15 = vsel %vm41_vm2, %v256_v14, 0.0  ;;  %v258_v23 = vpop.eup %257 }
 0x243   :  { %v171_v24 = vmul.f32 %v258_v23, %v166_v22  ;;  %v260_v25 = vpop.eup %259 }
 0x245   :  { %205 = vadd.xlane.f32.xlu1 %v204_v15  ;;  %v175_v26 = vadd.f32 %v260_v25, %v171_v24 }
 0x247   :  { %261 = vlog2.f32 %v175_v26 }
 0x251   :  { %v262_v29 = vpop.eup %261 }
 0x252   :  { %v177_v31 = vmul.f32 0.6931472, %v262_v29 }
 0x254   :  { %v178_v35 = vadd.f32 %v177_v31, %v167_v17 }
 0x2ce   :  { %v190_v27 = vpop.xlane.xlu1 %189 }
 0x2d2   :  { %v206_v28 = vpop.xlane.xlu1 %205 }
 0x2d3   :  { %263 = vlog2.f32 %v206_v28 }
 0x2d4   :  { %265 = vpow2.f32 %v192_v34 }
 0x2dd   :  { %v264_v32 = vpop.eup %263 }
 0x2de   :  { %v208_v33 = vmul.f32 0.6931472, %v264_v32  ;;  %v266_v39 = vpop.eup %265 }
 0x2df   :  { %v194_v40 = vadd.f32 %v266_v39, %v190_v27 }
 0x2e0   :  { %v209_v36 = vadd.f32 %v208_v33, %v200_v8 }
 0x2e2   :  { %v210_v37 = vsub.f32 %v209_v36, %v178_v35 }
 0x2e4   :  { %v211_v38 = vmul.f32 1.442695, %v210_v37 }
 0x2e6   :  { %267 = vpow2.f32 %v211_v38 }
 0x2e7   :  { %269 = vlog2.f32 %v194_v40 }
 0x2f0   :  { %v268_v41 = vpop.eup %267 }
 0x2f1   :  { %v213_v42 = vsub.f32 1.0, %v268_v41  ;;  %v270_v45 = vpop.eup %269 }
 0x2f2   :  { %v196_v46 = vmul.f32 0.6931472, %v270_v45 }
 0x2f3   :  { %v214_v43 = vmax.f32 %v213_v42, 1e-07 }
 0x2f4   :  { %v197_v49 = vadd.f32 %v196_v46, %v184_v6 }
 0x2f5   :  { %v215_v44 = vmin.f32 %v214_v43, 1.0 }
 0x2f7   :  { %271 = vlog2.f32 %v215_v44 }
 0x301   :  { %v272_v47 = vpop.eup %271 }
 0x302   :  { %v217_v48 = vmul.f32 0.6931472, %v272_v47 }
 0x304   :  { %v218_v50 = vadd.f32 %v217_v48, %v178_v35 }
 0x306   :  { %v219_v51 = vadd.f32 %v218_v50, %v197_v49 }
 0x308   :  { %220 = vst.msk [vmem:[%s404_s2] sm:$0xff] %vm43_vm0, %v219_v51 }
 0x309   :  { %225 = vsyncpa [#allocation6], 1 }
 0x30a   :  { %226 = vsyncpa [#allocation8], 1 }

</bundles_post_ra>
